<compile_context>
chip_gen: v5e
topology: v5e:2x2
jax: 0.10.0
libtpu: 0.0.40
codegen_flags: <defaults>
</compile_context>

<pallas_src>
import functools

import jax
import jax.numpy as jnp
from jax.experimental import pallas as pl
from jax.experimental.pallas import tpu as pltpu

NUM_CLASSES = 2          # BreakHis is a binary classification task
BN_EPS = 1e-5
TM_MAX = 256             # matmul row tile (multiple of 16 for bf16 operands; v7x-safe)
TN_MAX = 256             # matmul output-channel tile
STEM_K = 160             # stem im2col contraction 7*7*3 = 147, padded to a bf16 sublane multiple


def _round_up(x, m):
    return ((x + m - 1) // m) * m


# ----------------------------- Pallas kernels ---------------------------------------

def _mm_fused_kernel(*refs, relu, has_res):
    """(tm,K) @ (K,tn) on the MXU with folded-BN shift, optional residual add and ReLU
    fused into the epilogue.  Operands are bf16, accumulation/epilogue is f32."""
    if has_res:
        a_ref, b_ref, shift_ref, res_ref, o_ref = refs
    else:
        a_ref, b_ref, shift_ref, o_ref = refs
        res_ref = None
    y = jnp.dot(a_ref[...], b_ref[...], preferred_element_type=jnp.float32)
    y = y + shift_ref[...]
    if res_ref is not None:
        y = y + res_ref[...].astype(jnp.float32)
    if relu:
        y = jnp.maximum(y, 0.0)
    o_ref[...] = y.astype(o_ref.dtype)


def _conv3x3_kernel(x_ref, w_ref, shift_ref, o_ref, *, pitch, h, w, stride):
    """3x3 'same' conv for one image.  The padded activation is flattened to (rows, C) with
    row pitch `pitch` (multiple of 8), so tap (kh, kw) is a static row shift kh*pitch + kw
    of the same VMEM block.  The 9 taps accumulate in registers; BN shift + ReLU fused.
    For stride 2, the odd output rows are dropped in-kernel before the store."""
    m = h * pitch
    acc = None
    for kh in range(3):
        for kw in range(3):
            a = x_ref[pl.ds(kh * pitch + kw, m), :]
            d = jnp.dot(a, w_ref[kh * 3 + kw], preferred_element_type=jnp.float32)
            acc = d if acc is None else acc + d
    y = jnp.maximum(acc + shift_ref[...], 0.0)
    oc = y.shape[-1]
    y = y.reshape(h, pitch, oc)
    if stride == 2:
        y = y.reshape(h // 2, 2, pitch, oc)[:, 0]
    o_ref[...] = y[:, :w, :].astype(o_ref.dtype)


def _conv1x1_s2_kernel(x_ref, w_ref, shift_ref, o_ref, *, c):
    """1x1 stride-2 conv (downsample branch): x_ref holds one even input row with W-paired
    channels (OW, 2C); the even W columns are the first C lanes."""
    lhs = x_ref[:, :c]
    y = jnp.dot(lhs, w_ref[...], preferred_element_type=jnp.float32) + shift_ref[...]
    o_ref[...] = y.astype(o_ref.dtype)


def _maxpool3x3_s2_kernel(x_ref, o_ref, *, c, oh, ow):
    """MaxPool2d(3, 2, 1) for one image.  x_ref: (Hp2, 2, Wp2, 2C) = padded input with both
    H rows and W columns paired, so the 3x3/stride-2 window max reduces to contiguous
    sublane/lane slices (no strided loads)."""
    r0 = x_ref[:, 0]                       # padded rows 2*i      : (Hp2, Wp2, 2C)
    r1 = x_ref[:, 1]                       # padded rows 2*i + 1

    def colmax(r):
        a = r[:, :, :c]                    # padded cols 2*j
        b = r[:, :, c:]                    # padded cols 2*j + 1
        return jnp.maximum(jnp.maximum(a[:, :ow, :], b[:, :ow, :]), a[:, 1:ow + 1, :])

    c0 = colmax(r0)
    c1 = colmax(r1)
    o_ref[...] = jnp.maximum(jnp.maximum(c0[:oh], c1[:oh]), c0[1:oh + 1])


def _avgpool_fc_kernel(x_ref, w_ref, b_ref, o_ref):
    """AdaptiveAvgPool2d((1,1)) + flatten + nn.Linear fused: (N,HW,C) -> (N,num_classes)."""
    feats = jnp.mean(x_ref[...].astype(jnp.float32), axis=1)
    o_ref[...] = jnp.dot(feats, w_ref[...], preferred_element_type=jnp.float32) + b_ref[...]


# ----------------------------- Pallas wrappers ---------------------------------------

def _matmul_fused(a, b, shift, res, relu):
    """a: (M,K) bf16, b: (K,OC) bf16, shift: (1,OC) f32, res: (M,OC) bf16 or None."""
    M, K = a.shape
    OC = b.shape[1]
    tm = min(TM_MAX, _round_up(M, 16))
    tn = min(TN_MAX, OC)
    m_pad = _round_up(M, tm)
    if m_pad != M:
        a = jnp.pad(a, ((0, m_pad - M), (0, 0)))
        if res is not None:
            res = jnp.pad(res, ((0, m_pad - M), (0, 0)))

    in_specs = [
        pl.BlockSpec((tm, K), lambda i, j: (i, 0)),
        pl.BlockSpec((K, tn), lambda i, j: (0, j)),
        pl.BlockSpec((1, tn), lambda i, j: (0, j)),
    ]
    args = [a, b, shift]
    if res is not None:
        in_specs.append(pl.BlockSpec((tm, tn), lambda i, j: (i, j)))
        args.append(res)

    bytes_accessed = 2 * (m_pad * K + K * OC + m_pad * OC) + 4 * OC
    if res is not None:
        bytes_accessed += 2 * m_pad * OC

    out = pl.pallas_call(
        functools.partial(_mm_fused_kernel, relu=relu, has_res=res is not None),
        out_shape=jax.ShapeDtypeStruct((m_pad, OC), jnp.bfloat16),
        grid=(m_pad // tm, OC // tn),
        in_specs=in_specs,
        out_specs=pl.BlockSpec((tm, tn), lambda i, j: (i, j)),
        compiler_params=pltpu.CompilerParams(
            dimension_semantics=("parallel", "parallel")),
        cost_estimate=pl.CostEstimate(flops=2 * m_pad * K * OC,
                                      transcendentals=0,
                                      bytes_accessed=bytes_accessed),
    )(*args)
    return out[:M] if m_pad != M else out


def conv1x1_fused(x, w, shift, res, relu):
    """1x1 stride-1 conv + folded-BN shift (+ residual) (+ ReLU).  x NHWC bf16, w (Cin,OC)."""
    N, H, W, C = x.shape
    OC = w.shape[1]
    a = x.reshape(N * H * W, C)
    r = None if res is None else res.reshape(N * H * W, OC)
    out = _matmul_fused(a, w, shift, r, relu)
    return out.reshape(N, H, W, OC)


def conv1x1_down_s2(x, w, shift):
    """1x1 stride-2 conv (Bottleneck downsample, no ReLU).  H stride folded into the
    BlockSpec index_map, W stride into a lane slice of W-paired channels - no strided
    activation copy is materialized in HBM."""
    N, H, W, C = x.shape
    OC = w.shape[1]
    assert H % 2 == 0 and W % 2 == 0
    OH, OW = H // 2, W // 2
    xr = x.reshape(N, H, OW, 2 * C)                  # free reshape: pairs adjacent W columns
    tn = min(TN_MAX, OC)
    return pl.pallas_call(
        functools.partial(_conv1x1_s2_kernel, c=C),
        out_shape=jax.ShapeDtypeStruct((N, OH, OW, OC), jnp.bfloat16),
        grid=(N, OH, OC // tn),
        in_specs=[
            pl.BlockSpec((None, None, OW, 2 * C), lambda n, h, j: (n, 2 * h, 0, 0)),
            pl.BlockSpec((C, tn), lambda n, h, j: (0, j)),
            pl.BlockSpec((1, tn), lambda n, h, j: (0, j)),
        ],
        out_specs=pl.BlockSpec((None, None, OW, tn), lambda n, h, j: (n, h, 0, j)),
        compiler_params=pltpu.CompilerParams(
            dimension_semantics=("parallel", "parallel", "parallel")),
    )(xr, w, shift)


def conv3x3_fused(x, w9, shift, stride):
    """3x3 'same' (pad 1) conv at `stride`, with folded-BN shift + ReLU fused.
    w9: (9, Cin, OC) bf16, kh-major tap order."""
    N, H, W, C = x.shape
    OC = w9.shape[2]
    if stride == 2:
        assert H % 2 == 0 and W % 2 == 0
    pitch = _round_up(W + 2, 8)                      # sublane-aligned flattened row pitch
    # one pad op: conv padding (1 top, 1 left), +2 bottom halo rows, right pad to `pitch`.
    xp = jnp.pad(x, ((0, 0), (1, 2), (1, pitch - W - 1), (0, 0)))
    R = (H + 3) * pitch
    xf = xp.reshape(N, R, C)                         # free reshape
    OH = H // stride
    tn = min(TN_MAX, OC)
    out = pl.pallas_call(
        functools.partial(_conv3x3_kernel, pitch=pitch, h=H, w=W, stride=stride),
        out_shape=jax.ShapeDtypeStruct((N, OH, W, OC), jnp.bfloat16),
        grid=(N, OC // tn),
        in_specs=[
            pl.BlockSpec((None, R, C), lambda n, j: (n, 0, 0)),
            pl.BlockSpec((9, C, tn), lambda n, j: (0, 0, j)),
            pl.BlockSpec((1, tn), lambda n, j: (0, j)),
        ],
        out_specs=pl.BlockSpec((None, OH, W, tn), lambda n, j: (n, 0, 0, j)),
        compiler_params=pltpu.CompilerParams(
            dimension_semantics=("parallel", "parallel")),
        cost_estimate=pl.CostEstimate(
            flops=2 * 9 * N * H * pitch * C * OC,
            transcendentals=0,
            bytes_accessed=2 * (N * R * C + 9 * C * OC + N * OH * W * OC)),
    )(xf, w9, shift)
    if stride == 2:
        # TODO(synk): odd output columns are still computed then dropped here (2x FLOPs on
        # the 3 stride-2 convs); a parity-decomposed input layout would remove it.
        out = out[:, :, ::2, :]
    return out


def conv_im2col_fused(x, w_mat, shift, k, stride, pad, relu):
    """General strided conv via explicit im2col - used only for the 3-channel stem conv,
    where the patch expansion is tiny.  w_mat: (STEM_K, OC) bf16 (contraction zero-padded)."""
    N, H, W, C = x.shape
    OC = w_mat.shape[1]
    xp = jnp.pad(x, ((0, 0), (pad, pad), (pad, pad), (0, 0)))
    OH = (H + 2 * pad - k) // stride + 1
    OW = (W + 2 * pad - k) // stride + 1
    cols = [xp[:, kh:kh + stride * OH:stride, kw:kw + stride * OW:stride, :]
            for kh in range(k) for kw in range(k)]
    patches = jnp.stack(cols, axis=3).reshape(N * OH * OW, k * k * C)
    patches = jnp.pad(patches, ((0, 0), (0, w_mat.shape[0] - k * k * C)))
    out = _matmul_fused(patches, w_mat, shift, None, relu)
    return out.reshape(N, OH, OW, OC)


@jax.jit
def maxpool3x3_s2(x):
    """PyTorch MaxPool2d(kernel_size=3, stride=2, padding=1) on NHWC bf16 (even H, W)."""
    N, H, W, C = x.shape
    OH, OW = H // 2, W // 2
    Hp = _round_up(H + 2, 2)
    Wp = _round_up(W + 2, 2)
    xp = jnp.pad(x, ((0, 0), (1, Hp - H - 1), (1, Wp - W - 1), (0, 0)),
                 constant_values=-jnp.inf)
    xr = xp.reshape(N, Hp // 2, 2, Wp // 2, 2 * C)   # free reshape: pair H rows & W columns
    return pl.pallas_call(
        functools.partial(_maxpool3x3_s2_kernel, c=C, oh=OH, ow=OW),
        out_shape=jax.ShapeDtypeStruct((N, OH, OW, C), x.dtype),
        grid=(N,),
        in_specs=[pl.BlockSpec((None, Hp // 2, 2, Wp // 2, 2 * C),
                               lambda n: (n, 0, 0, 0, 0))],
        out_specs=pl.BlockSpec((None, OH, OW, C), lambda n: (n, 0, 0, 0)),
        compiler_params=pltpu.CompilerParams(dimension_semantics=("parallel",)),
    )(xr)


@jax.jit
def stem_forward(x_nchw, w, shift):
    """NCHW f32 -> NHWC bf16, then the 7x7/s2/p3 stem conv (+ folded BN shift + ReLU)."""
    x = jnp.transpose(x_nchw, (0, 2, 3, 1)).astype(jnp.bfloat16)
    return conv_im2col_fused(x, w, shift, k=7, stride=2, pad=3, relu=True)


@jax.jit
def avgpool_fc(x, w, b):
    """AdaptiveAvgPool2d((1,1)) + flatten + nn.Linear in one kernel (tiny tail tensor)."""
    N, H, W, C = x.shape
    x3 = x.reshape(N, H * W, C)
    return pl.pallas_call(
        _avgpool_fc_kernel,
        out_shape=jax.ShapeDtypeStruct((N, w.shape[1]), jnp.float32),
    )(x3, w, b)


@functools.partial(jax.jit, static_argnames=("stride",))
def bottleneck_forward(x, p, stride):
    identity = x
    out = conv1x1_fused(x, p["w1"], p["s1"], None, relu=True)
    out = conv3x3_fused(out, p["w2"], p["s2"], stride=stride)
    if "wd" in p:
        if stride == 1:
            identity = conv1x1_fused(x, p["wd"], p["sd"], None, relu=False)
        else:
            identity = conv1x1_down_s2(x, p["wd"], p["sd"])
    # conv3 + BN shift + residual add + ReLU, all fused in one kernel.
    return conv1x1_fused(out, p["w3"], p["s3"], identity, relu=True)


# ----------------------------- parameter construction --------------------------------

def make_resnet152_params(key, num_classes):
    """ResNet-152: blocks per stage = [3, 8, 36, 3], Bottleneck expansion = 4.
    BatchNorm (inference / running stats) is folded into the conv weights; weights are
    stored in the layouts expected by the fused kernels, pre-cast to bf16."""
    cfg = [(64, 3), (128, 8), (256, 36), (512, 3)]
    counter = [0]

    def nk():
        counter[0] += 1
        return jax.random.fold_in(key, counter[0])

    def conv_w(oc, ic, k):
        fan_in = ic * k * k
        return jax.random.normal(nk(), (oc, ic, k, k), jnp.float32) * jnp.sqrt(2.0 / fan_in)

    def bn_fold(c, gamma=1.0):
        g = jnp.full((c,), gamma, jnp.float32)
        beta = jnp.zeros((c,), jnp.float32)
        mean = jnp.zeros((c,), jnp.float32)
        var = jnp.ones((c,), jnp.float32)
        scale = g / jnp.sqrt(var + BN_EPS)
        shift = (beta - mean * scale).reshape(1, c)
        return scale, shift

    def fold_1x1(w, scale):                       # (OC,Cin,1,1) -> (Cin,OC) bf16
        wf = w * scale[:, None, None, None]
        return jnp.transpose(wf[:, :, 0, 0], (1, 0)).astype(jnp.bfloat16)

    def fold_3x3(w, scale):                       # (OC,Cin,3,3) -> (9, Cin, OC) bf16
        oc, ic, k, _ = w.shape
        wf = w * scale[:, None, None, None]
        return jnp.transpose(wf, (2, 3, 1, 0)).reshape(k * k, ic, oc).astype(jnp.bfloat16)

    def fold_im2col(w, scale, k_pad):             # (OC,Cin,k,k) -> (k_pad, OC) bf16
        oc, ic, k, _ = w.shape
        wf = w * scale[:, None, None, None]
        wm = jnp.transpose(wf, (2, 3, 1, 0)).reshape(k * k * ic, oc)
        wm = jnp.pad(wm, ((0, k_pad - k * k * ic), (0, 0)))
        return wm.astype(jnp.bfloat16)

    sc, sh = bn_fold(64)
    params = {"stem_w": fold_im2col(conv_w(64, 3, 7), sc, STEM_K), "stem_shift": sh}

    inplanes = 64
    layers = []
    for li, (planes, nblocks) in enumerate(cfg):
        blocks = []
        for bi in range(nblocks):
            sc1, sh1 = bn_fold(planes)
            sc2, sh2 = bn_fold(planes)
            # Small gamma on the last BN of the branch keeps the synthetic network
            # numerically bounded across 50 residual blocks.
            sc3, sh3 = bn_fold(planes * 4, gamma=0.1)
            block = {
                "w1": fold_1x1(conv_w(planes, inplanes, 1), sc1), "s1": sh1,
                "w2": fold_3x3(conv_w(planes, planes, 3), sc2), "s2": sh2,
                "w3": fold_1x1(conv_w(planes * 4, planes, 1), sc3), "s3": sh3,
            }
            if bi == 0:
                scd, shd = bn_fold(planes * 4)
                block["wd"] = fold_1x1(conv_w(planes * 4, inplanes, 1), scd)
                block["sd"] = shd
            blocks.append(block)
            inplanes = planes * 4
        layers.append(blocks)
    params["layers"] = layers

    params["fc_w"] = jax.random.normal(nk(), (512 * 4, num_classes), jnp.float32) * 0.01
    params["fc_b"] = jnp.zeros((1, num_classes), jnp.float32)
    return params


# ----------------------------- forward pass ------------------------------------------

def resnet152_forward(params, x_nchw):
    x = stem_forward(x_nchw, params["stem_w"], params["stem_shift"])
    x = maxpool3x3_s2(x)
    for li, blocks in enumerate(params["layers"]):
        for bi, p in enumerate(blocks):
            stride = 2 if (li > 0 and bi == 0) else 1
            x = bottleneck_forward(x, p, stride=stride)
    return avgpool_fc(x, params["fc_w"], params["fc_b"])    # (N, num_classes) f32


# ----------------------------- main ---------------------------------------------------

if __name__ == "__main__":
    key = jax.random.PRNGKey(0)
    k_params, k_input = jax.random.split(key)

    params = make_resnet152_params(k_params, NUM_CLASSES)

    # Small input consistent with the module: batch=2, 3 channels (RGB), 32x32 spatial.
    x = jax.random.normal(k_input, (2, 3, 32, 32), jnp.float32)

    logits = resnet152_forward(params, x)
    logits = jax.block_until_ready(logits)

    assert logits.shape == (2, NUM_CLASSES)
    assert bool(jnp.all(jnp.isfinite(logits)))
    print("KERNEL_OK")
</pallas_src>

<mosaic_0001>
module attributes {stable_mosaic.version = 11 : i64} {
  func.func @_mm_fused_kernel(%arg0: i32, %arg1: i32, %arg2: memref<256x160xbf16, #tpu.memory_space<vmem>>, %arg3: memref<160x64xbf16, #tpu.memory_space<vmem>>, %arg4: memref<1x64xf32, #tpu.memory_space<vmem>>, %arg5: memref<256x64xbf16, #tpu.memory_space<vmem>>) attributes {dimension_semantics = [#tpu.dimension_semantics<parallel>, #tpu.dimension_semantics<parallel>], iteration_bounds = array<i64: 2, 1>, scalar_prefetch = 0 : i64, scratch_operands = 0 : i64, tpu.core_type = #tpu.core_type<tc>, window_params = [{transform_indices = @transform_0, window_bounds = array<i64: 256, 160>}, {transform_indices = @transform_1, window_bounds = array<i64: 160, 64>}, {transform_indices = @transform_2, window_bounds = array<i64: 1, 64>}, {transform_indices = @transform_3, window_bounds = array<i64: 256, 64>}]} {
    %c0 = arith.constant 0 : index
    %c0_0 = arith.constant 0 : index
    %0 = vector.load %arg2[%c0, %c0_0] : memref<256x160xbf16, #tpu.memory_space<vmem>>, vector<256x160xbf16>
    %c0_1 = arith.constant 0 : index
    %c0_2 = arith.constant 0 : index
    %1 = vector.load %arg3[%c0_1, %c0_2] : memref<160x64xbf16, #tpu.memory_space<vmem>>, vector<160x64xbf16>
    %cst = arith.constant dense<0.000000e+00> : vector<256x64xf32>
    %2 = tpu.matmul %0, %1, %cst {dimension_numbers = #tpu.dot_dimension_numbers<[1], [0], [0], [1], [0, 0, 1, 1], [], []>} : vector<256x160xbf16>, vector<160x64xbf16>, vector<256x64xf32> -> vector<256x64xf32>
    %c0_3 = arith.constant 0 : index
    %c0_4 = arith.constant 0 : index
    %3 = vector.load %arg4[%c0_3, %c0_4] : memref<1x64xf32, #tpu.memory_space<vmem>>, vector<1x64xf32>
    %4 = vector.broadcast %3 : vector<1x64xf32> to vector<256x64xf32>
    %5 = arith.addf %2, %4 : vector<256x64xf32>
    %cst_5 = arith.constant 0.000000e+00 : f32
    %6 = vector.broadcast %cst_5 : f32 to vector<256x64xf32>
    %7 = arith.maximumf %5, %6 : vector<256x64xf32>
    %8 = arith.truncf %7 : vector<256x64xf32> to vector<256x64xbf16>
    %c0_6 = arith.constant 0 : index
    %c0_7 = arith.constant 0 : index
    %9 = vector.load %arg5[%c0_6, %c0_7] : memref<256x64xbf16, #tpu.memory_space<vmem>>, vector<256x64xbf16>
    tpu.vector_store %arg5[%c0_6, %c0_7], %8 {strides = array<i32>} : memref<256x64xbf16, #tpu.memory_space<vmem>>, vector<256x64xbf16>,
    return
  }
  func.func @transform_0(%arg0: i32, %arg1: i32) -> (i32, i32) {
    %c0_i32 = arith.constant 0 : i32
    %c0_i32_0 = arith.constant 0 : i32
    return %arg0, %c0_i32 : i32, i32
  }
  func.func @transform_1(%arg0: i32, %arg1: i32) -> (i32, i32) {
    %c0_i32 = arith.constant 0 : i32
    %c0_i32_0 = arith.constant 0 : i32
    return %c0_i32, %arg1 : i32, i32
  }
  func.func @transform_2(%arg0: i32, %arg1: i32) -> (i32, i32) {
    %c0_i32 = arith.constant 0 : i32
    %c0_i32_0 = arith.constant 0 : i32
    return %c0_i32, %arg1 : i32, i32
  }
  func.func @transform_3(%arg0: i32, %arg1: i32) -> (i32, i32) {
    %c0_i32 = arith.constant 0 : i32
    return %arg0, %arg1 : i32, i32
  }
}

</mosaic_0001>

<bundles_post_ra>
// kernel: stem_forward.1
= control target key start
LH: loop header
LB: loop body
LE: loop exit
PB: predicated region body
PF: predicated region fallthrough
CT: control target
= control target key end

     0   :  { %8 = vsyncpa [#allocation3], 0  ;;  %s1657_s0 = inlined_call_operand.vmem [shape: bf16[512,160], index: 0, kind: input, shape index: {}]   ;;  %s1658_s1 = inlined_call_operand.vmem [shape: bf16[160,64], index: 1, kind: input, shape index: {}]   ;;  %s1659_s2 = inlined_call_operand.vmem [shape: f32[1,64], index: 2, kind: input, shape index: {}]   ;;  %s1660_s3 = inlined_call_operand.hbm [shape: bf16[512,64], index: 3, kind: output, shape index: {}]  }
   0x1   :  { %10 = vsyncpa [#allocation3 + $0x1], 0  ;;  %s1335_s12 = smov 0   ;;  %s1337_s13 = smov 0  }
   0x2   :  { %s1339_s14 = smov 0   ;;  %s1341_s15 = smov 0  }
   0x3   :  { %s1343_s16 = smov 0   ;;  %s1345_s17 = smov 0  }
   0x4 LB: > { %s921_s18 = sadd.s32 4294967295, %s1311_s17   ;;  %s922_s19 = sadd.s32 4294967294, %s1311_s17   ;;  %s1311_s17 = sphi %s1345_s17, %s16_s17   ;;  %s1307_s16 = sphi %s1343_s16, %s1667_s16   ;;  %s1303_s15 = sphi %s1341_s15, %s1666_s15   ;;  %s1299_s14 = sphi %s1339_s14, %s1665_s14   ;;  %s1295_s13 = sphi %s1337_s13, %s1664_s13   ;;  %s1291_s12 = sphi %s1335_s12, %s1663_s12  }
   0x5   : > { %s28_s20 = sadd.s32 1, %s1307_s16  ;;  %s115_s21 = sadd.s32 1, %s1299_s14 }
   0x6   : > { %p30_p0 = scmp.ge.s32.totalorder %s28_s20, 2  ;;  %p125_p1 = scmp.ne.s32.totalorder %s1299_s14, %s1295_s13 }
   0x7   : > { %p126_p2 = scmp.eq.s32.totalorder %s921_s18, 1  ;;  %p131_p3 = scmp.ne.s32.totalorder %s1295_s13, %s1291_s12 }
   0x8   : > { %s1669_s20 = smov (%p30_p0, %s28_s20), 0  ;;  %p132_p5 = scmp.eq.s32.totalorder %s922_s19, 1 }
   0x9   : > { %p1375_p4 = por %p126_p2, %p125_p1  ;;  %s110_s23 = ssub.s32 %s1307_s16, %s1669_s20 }
   0xa   : > { %p927_p6 = scmp.ge.s32.totalorder %s1311_s17, 1  ;;  %p113_p7 = scmp.eq.s32.totalorder %s110_s23, 0 }
   0xb   : > { %p1382_p8 = por %p132_p5, %p131_p3  ;;  %p173_p9 = scmp.lt.s32.totalorder %s1311_s17, 3 }
   0xc   : > { %s1388_s25 = scalar_select %p113_p7, %s1299_s14, %s115_s21  }
   0xd   : > { %p174_p10 = pnand %p927_p6, %p173_p9 }
   0xe   : > { %s929_s30 = sshll.u32 (!%p174_p10), %s1303_s15, 5  ;;  %s202_s9 = sand.u32 (!%p174_p10), 1, %s1295_s13  }
   0xf   : > { %177 = sbr.rel (%p174_p10) target bundleno = 317 (0x13d), region = 32  ;;  %p206_p11 = scmp.lt.s32.totalorder (!%p174_p10), %s929_s30, 63 }
  0x10   : > { %s928_s10 = sshll.u32 (!%p174_p10), %s202_s9, 7  ;;  %s1164_s18 = sshll.u32 (!%p174_p10), %s1303_s15, 7 }
  0x11   : > { %s818_s23 = scalar_lea.hbm (!%p174_p10), %s1660_s3, %s1164_s18  ;;  %s806_s27 = scalar_lea.sflag (!%p174_p10), [#allocation3], %s202_s9 }
  0x12   : > { %s821_s26 = sshll.u32 (!%p174_p10), %s818_s23, 4  ;;  %s1253_s5 = scalar_lea.hbm (!%p174_p10), %s1660_s3, 256  ;;  %s822_s26 = int_to_ptr.hbm [resolvable:$true] %s821_s26 }
  0x13   : > { %s1247_s28 = sshra.s32 (!%p174_p10), %s822_s26, 4  ;;  %s1248_s28 = int_to_ptr.hbm [resolvable:$true] %s1247_s28 }
  0x14   : > { %v1161_v0 = vld [vmem:[%s1658_s1 + $0x38] sm:$0xff]  ;;  %v1163_v1 = vld [vmem:[%s1658_s1 + $0x48] sm:$0xff]  ;;  %v1160_v2 = vld [vmem:[%s1658_s1 + $0x30] sm:$0xff]  ;;  %s1671_s30 = smov (!%p206_p11, %s929_s30), 63  ;;  %vm481_vm0 = vcmask 261120   ;;  %vm772_vm1 = vcmask 519168   ;;  %p1254_p1 = scmp.lt.s32.totalorder %s1248_s28, %s1660_s3 }
  0x15   : > { %530 = vmatpush.bf16.msra.mxu0 %v1161_v0  ;;  %1165 = vmatpush.bf16.msra.mxu2 %v1161_v0  ;;  %v1162_v3 = vld [vmem:[%s1658_s1 + $0x40] sm:$0xff]  ;;  %s1121_s8 = sshll.u32 %s1671_s30, 3  ;;  %v1159_v4 = vld [vmem:[%s1658_s1 + $0x28] sm:$0xff]  ;;  %v1157_v12 = vld [vmem:[%s1658_s1 + $0x18] sm:$0xff]  ;;  %s1249_s29 = scalar_lea.hbm %s1248_s28, 128 }
  0x16   : > { %625 = vmatpush.bf16.msra.mxu1 %v1163_v1  ;;  %1173 = vmatpush.bf16.msra.mxu3 %v1163_v1  ;;  %s1406_s11 = scalar_lea.vmem %s1657_s0, %s1121_s8  ;;  %v1158_v8 = vld [vmem:[%s1658_s1 + $0x20] sm:$0xff]  ;;  %v1156_v13 = vld [vmem:[%s1658_s1 + $0x10] sm:$0xff]  ;;  %v1155_v17 = vld [vmem:[%s1658_s1 + $0x8] sm:$0xff]  ;;  %p1250_p12 = scmp.ne.s32.totalorder %s1248_s28, %s1249_s29 }
  0x17   : > { %v1122_v5 = vld [vmem:[%s1406_s11 + $0x4] sm:$0xf]  ;;  %v936_v6 = vld [vmem:[%s1406_s11 + $0x8] sm:$0xf0]  ;;  %v1140_v9 = vld [vmem:[%s1406_s11 + $0x94] sm:$0xf]  ;;  %p1255_p2 = scmp.lt.s32.totalorder %s1253_s5, %s1249_s29 }
  0x18   : > { %v939_v7 = vor.u32 %v1122_v5, %v936_v6  ;;  %v1008_v10 = vld [vmem:[%s1406_s11 + $0x98] sm:$0xf0]  ;;  %v1124_v14 = vld [vmem:[%s1406_s11 + $0x14] sm:$0xf]  ;;  %v1142_v18 = vld [vmem:[%s1406_s11 + $0xa4] sm:$0xf]  ;;  %p1251_p13 = pnand %p1250_p12, %p1375_p4 }
  0x19   : > { %531 = vmatpush.bf16.msra.mxu0 %v1160_v2  ;;  %1166 = vmatpush.bf16.msra.mxu2 %v1160_v2  ;;  %v1011_v11 = vor.u32 %v1140_v9, %v1008_v10  ;;  %v944_v15 = vld [vmem:[%s1406_s11 + $0x18] sm:$0xf0]  ;;  %v1016_v19 = vld [vmem:[%s1406_s11 + $0xa8] sm:$0xf0]  ;;  %v1154_v20 = vld [vmem:[%s1658_s1] sm:$0xff]  ;;  %p1256_p3 = por %p1255_p2, %p1254_p1 }
  0x1a   : > { %626 = vmatpush.bf16.msra.mxu1 %v1162_v3  ;;  %1174 = vmatpush.bf16.msra.mxu3 %v1162_v3  ;;  %v947_v16 = vor.u32 %v1124_v14, %v944_v15  ;;  %v934_v21 = vld [vmem:[%s1406_s11] sm:$0xf]  ;;  %v1123_v22 = vld [vmem:[%s1406_s11 + $0x4] sm:$0xf0]  ;;  %v1019_v23 = vor.u32 %v1142_v18, %v1016_v19  ;;  %v1126_v28 = vld [vmem:[%s1406_s11 + $0x24] sm:$0xf]  ;;  %p1252_p0 = pneg %p1251_p13 }
  0x1b   : > { %v998_v24 = vld [vmem:[%s1406_s11 + $0x80] sm:$0xf]  ;;  %v1139_v25 = vld [vmem:[%s1406_s11 + $0x84] sm:$0xf0]  ;;  %v935_v26 = vor.u32 %v1123_v22, %v934_v21  ;;  %v952_v29 = vld [vmem:[%s1406_s11 + $0x28] sm:$0xf0] }
  0x1c   : > { %v999_v27 = vor.u32 %v1139_v25, %v998_v24  ;;  %v955_v30 = vor.u32 %v1126_v28, %v952_v29  ;;  %v1144_v31 = vld [vmem:[%s1406_s11 + $0xb4] sm:$0xf]  ;;  %v1024_v32 = vld [vmem:[%s1406_s11 + $0xb8] sm:$0xf0]  ;;  %v942_v33 = vld [vmem:[%s1406_s11 + $0x10] sm:$0xf]  ;;  %p1257_p5 = pnand %p1256_p3, %p1252_p0 }
  0x1d   : > { %1100 = vmatmul.msk.bf16.vlgmr.msra.gmra.mxu1 %vm481_vm0, %v939_v7  ;;  %532 = vmatpush.bf16.msra.mxu0 %v1159_v4  ;;  %v1125_v34 = vld [vmem:[%s1406_s11 + $0x14] sm:$0xf0]  ;;  %v1027_v35 = vor.u32 %v1144_v31, %v1024_v32  ;;  %v1006_v36 = vld [vmem:[%s1406_s11 + $0x90] sm:$0xf]  ;;  %v1128_v40 = vld [vmem:[%s1406_s11 + $0x34] sm:$0xf] }
  0x1e   : > { %1167 = vmatpush.bf16.msra.mxu2 %v1159_v4  ;;  %1109 = vmatmul.msk.bf16.vlgmr.msra.gmra.mxu3 %vm481_vm0, %v1011_v11  ;;  %v1141_v37 = vld [vmem:[%s1406_s11 + $0x94] sm:$0xf0]  ;;  %v943_v38 = vor.u32 %v1125_v34, %v942_v33  ;;  %v960_v41 = vld [vmem:[%s1406_s11 + $0x38] sm:$0xf0]  ;;  %v1146_v43 = vld [vmem:[%s1406_s11 + $0xc4] sm:$0xf] }
  0x1f   : > { %v1007_v39 = vor.u32 %v1141_v37, %v1006_v36  ;;  %v963_v42 = vor.u32 %v1128_v40, %v960_v41  ;;  %v1032_v44 = vld [vmem:[%s1406_s11 + $0xc8] sm:$0xf0]  ;;  %v950_v45 = vld [vmem:[%s1406_s11 + $0x20] sm:$0xf]  ;;  %v1127_v46 = vld [vmem:[%s1406_s11 + $0x24] sm:$0xf0] }
  0x20   : > { %v1035_v47 = vor.u32 %v1146_v43, %v1032_v44  ;;  %v1014_v48 = vld [vmem:[%s1406_s11 + $0xa0] sm:$0xf]  ;;  %v1143_v49 = vld [vmem:[%s1406_s11 + $0xa4] sm:$0xf0]  ;;  %v951_v50 = vor.u32 %v1127_v46, %v950_v45  ;;  %v1130_v52 = vld [vmem:[%s1406_s11 + $0x44] sm:$0xf] }
  0x21   : > { %533 = vmatpush.bf16.msra.mxu0 %v1158_v8  ;;  %v1015_v51 = vor.u32 %v1143_v49, %v1014_v48  ;;  %v968_v53 = vld [vmem:[%s1406_s11 + $0x48] sm:$0xf0]  ;;  %v1148_v55 = vld [vmem:[%s1406_s11 + $0xd4] sm:$0xf]  ;;  %v1040_v56 = vld [vmem:[%s1406_s11 + $0xd8] sm:$0xf0] }
  0x22   : > { %1168 = vmatpush.bf16.msra.mxu2 %v1158_v8  ;;  %v971_v54 = vor.u32 %v1130_v52, %v968_v53  ;;  %v958_v57 = vld [vmem:[%s1406_s11 + $0x30] sm:$0xf]  ;;  %v1129_v58 = vld [vmem:[%s1406_s11 + $0x34] sm:$0xf0]  ;;  %v1043_v59 = vor.u32 %v1148_v55, %v1040_v56  ;;  %v1132_v0 = vld [vmem:[%s1406_s11 + $0x54] sm:$0xf] }
  0x23   : > { %v1022_v60 = vld [vmem:[%s1406_s11 + $0xb0] sm:$0xf]  ;;  %v1145_v61 = vld [vmem:[%s1406_s11 + $0xb4] sm:$0xf0]  ;;  %v959_v62 = vor.u32 %v1129_v58, %v958_v57  ;;  %v976_v1 = vld [vmem:[%s1406_s11 + $0x58] sm:$0xf0] }
  0x24   : > { %v1023_v63 = vor.u32 %v1145_v61, %v1022_v60  ;;  %v979_v2 = vor.u32 %v1132_v0, %v976_v1  ;;  %v1150_v3 = vld [vmem:[%s1406_s11 + $0xe4] sm:$0xf]  ;;  %v1048_v4 = vld [vmem:[%s1406_s11 + $0xe8] sm:$0xf0]  ;;  %v966_v5 = vld [vmem:[%s1406_s11 + $0x40] sm:$0xf] }
  0x25   : > { %534 = vmatpush.bf16.msra.mxu0 %v1157_v12  ;;  %v1131_v6 = vld [vmem:[%s1406_s11 + $0x44] sm:$0xf0]  ;;  %v1051_v7 = vor.u32 %v1150_v3, %v1048_v4  ;;  %v1030_v8 = vld [vmem:[%s1406_s11 + $0xc0] sm:$0xf]  ;;  %v1152_v15 = vld [vmem:[%s1406_s11 + $0xf4] sm:$0xf] }
  0x26   : > { %1169 = vmatpush.bf16.msra.mxu2 %v1157_v12  ;;  %v1147_v9 = vld [vmem:[%s1406_s11 + $0xc4] sm:$0xf0]  ;;  %v967_v10 = vor.u32 %v1131_v6, %v966_v5  ;;  %v1134_v12 = vld [vmem:[%s1406_s11 + $0x64] sm:$0xf]  ;;  %v1133_v18 = vld [vmem:[%s1406_s11 + $0x54] sm:$0xf0] }
  0x27   : > { %v1031_v11 = vor.u32 %v1147_v9, %v1030_v8  ;;  %v1149_v21 = vld [vmem:[%s1406_s11 + $0xd4] sm:$0xf0]  ;;  %v1136_v24 = vld [vmem:[%s1406_s11 + $0x74] sm:$0xf]  ;;  %v992_v25 = vld [vmem:[%s1406_s11 + $0x78] sm:$0xf0] }
  0x28   : > { %v1135_v28 = vld [vmem:[%s1406_s11 + $0x64] sm:$0xf0]  ;;  %v1046_v29 = vld [vmem:[%s1406_s11 + $0xe0] sm:$0xf]  ;;  %v1138_v33 = vld [vmem:[%s1406_s11 + $0x84] sm:$0xf] }
  0x29   : > { %535 = vmatpush.bf16.msra.mxu0 %v1156_v13  ;;  %v1000_v34 = vld [vmem:[%s1406_s11 + $0x88] sm:$0xf0]  ;;  %v990_v37 = vld [vmem:[%s1406_s11 + $0x70] sm:$0xf]  ;;  %v1153_v40 = vld [vmem:[%s1406_s11 + $0xf4] sm:$0xf0] }
  0x2a   : > { %1170 = vmatpush.bf16.msra.mxu2 %v1156_v13  ;;  %v984_v13 = vld [vmem:[%s1406_s11 + $0x68] sm:$0xf0]  ;;  %v1509_v45 = vld [vmem:[%s1659_s2] ss:$0 sm:$0xff] }
  0x2b   : > { %v987_v14 = vor.u32 %v1134_v12, %v984_v13 }
  0x2d   : > { %1101 = vmatmul.msk.bf16.gmra.mxu1 %vm481_vm0, %v947_v16  ;;  %536 = vmatpush.bf16.msra.mxu0 %v1155_v17  ;;  %v1056_v16 = vld [vmem:[%s1406_s11 + $0xf8] sm:$0xf0] }
  0x2e   : > { %1171 = vmatpush.bf16.msra.mxu2 %v1155_v17  ;;  %1110 = vmatmul.msk.bf16.gmra.mxu3 %vm481_vm0, %v1019_v23  ;;  %v974_v17 = vld [vmem:[%s1406_s11 + $0x50] sm:$0xf]  ;;  %v1059_v19 = vor.u32 %v1152_v15, %v1056_v16 }
  0x2f   : > { %v975_v22 = vor.u32 %v1133_v18, %v974_v17 }
  0x31   : > { %537 = vmatpush.bf16.msra.mxu0 %v1154_v20 }
  0x32   : > { %1172 = vmatpush.bf16.msra.mxu2 %v1154_v20  ;;  %v1038_v20 = vld [vmem:[%s1406_s11 + $0xd0] sm:$0xf] }
  0x33   : > { %v1039_v23 = vor.u32 %v1149_v21, %v1038_v20 }
  0x34   : > { %538 = vmatmul.bf16.vlgmr.msra.gmra.mxu0 %v935_v26  ;;  %v995_v26 = vor.u32 %v1136_v24, %v992_v25 }
  0x35   : > { %578 = vmatmul.bf16.vlgmr.msra.gmra.mxu2 %v999_v27  ;;  %v982_v27 = vld [vmem:[%s1406_s11 + $0x60] sm:$0xf] }
  0x36   : > { %v983_v31 = vor.u32 %v1135_v28, %v982_v27 }
  0x3d   : > { %1102 = vmatmul.msk.bf16.gmra.mxu1 %vm481_vm0, %v955_v30  ;;  %v1151_v30 = vld [vmem:[%s1406_s11 + $0xe4] sm:$0xf0] }
  0x3e   : > { %1111 = vmatmul.msk.bf16.gmra.mxu3 %vm481_vm0, %v1027_v35  ;;  %v1047_v32 = vor.u32 %v1151_v30, %v1046_v29  ;;  %v1003_v35 = vor.u32 %v1138_v33, %v1000_v34 }
  0x44   : > { %543 = vmatmul.bf16.gmra.mxu0 %v943_v38  ;;  %v1137_v38 = vld [vmem:[%s1406_s11 + $0x74] sm:$0xf0] }
  0x45   : > { %583 = vmatmul.bf16.gmra.mxu2 %v1007_v39  ;;  %v1054_v39 = vld [vmem:[%s1406_s11 + $0xf0] sm:$0xf]  ;;  %v991_v41 = vor.u32 %v1137_v38, %v990_v37  ;;  %s1517_s11 = scalar_lea.vmem [#allocation2], %s928_s10 }
  0x46   : > { %s819_s15 = sshll.u32 %s1517_s11, 4  ;;  %s820_s15 = int_to_ptr.vmem [resolvable:$true] %s819_s15 }
  0x4d   : > { %1103 = vmatmul.msk.bf16.gmra.mxu1 %vm481_vm0, %v963_v42  ;;  %v1055_v42 = vor.u32 %v1153_v40, %v1054_v39 }
  0x4e   : > { %1112 = vmatmul.msk.bf16.gmra.mxu3 %vm481_vm0, %v1035_v47 }
  0x54   : > { %548 = vmatmul.bf16.gmra.mxu0 %v951_v50 }
  0x55   : > { %588 = vmatmul.bf16.gmra.mxu2 %v1015_v51 }
  0x5d   : > { %1104 = vmatmul.msk.bf16.gmra.mxu1 %vm481_vm0, %v971_v54 }
  0x5e   : > { %1113 = vmatmul.msk.bf16.gmra.mxu3 %vm481_vm0, %v1043_v59 }
  0x64   : > { %553 = vmatmul.bf16.gmra.mxu0 %v959_v62 }
  0x65   : > { %593 = vmatmul.bf16.gmra.mxu2 %v1023_v63 }
  0x6d   : > { %1105 = vmatmul.msk.bf16.gmra.mxu1 %vm481_vm0, %v979_v2 }
  0x6e   : > { %1114 = vmatmul.msk.bf16.gmra.mxu3 %vm481_vm0, %v1051_v7 }
  0x74   : > { %558 = vmatmul.bf16.gmra.mxu0 %v967_v10 }
  0x75   : > { %598 = vmatmul.bf16.gmra.mxu2 %v1031_v11 }
  0x7d   : > { %1106 = vmatmul.msk.bf16.gmra.mxu1 %vm481_vm0, %v987_v14 }
  0x7e   : > { %1115 = vmatmul.msk.bf16.gmra.mxu3 %vm481_vm0, %v1059_v19 }
  0x84   : > { %563 = vmatmul.bf16.gmra.mxu0 %v975_v22 }
  0x85   : > { %603 = vmatmul.bf16.gmra.mxu2 %v1039_v23 }
  0x8d   : > { %1107 = vmatmul.msk.bf16.gmra.mxu1 %vm481_vm0, %v995_v26 }
  0x94   : > { %568 = vmatmul.bf16.gmra.mxu0 %v983_v31 }
  0x95   : > { %608 = vmatmul.bf16.gmra.mxu2 %v1047_v32 }
  0x9a   : > { %v628_v36 = vpop.f32.mrf.mxu1 }
  0x9d   : > { %1108 = vmatmul.msk.bf16.gmra.mxu1 %vm481_vm0, %v1003_v35 }
  0xa1   : > { %v673_v46 = vpop.f32.mrf.mxu3 }
  0xa2   : > { %v630_v43 = vpop.f32.mrf.mxu1 }
  0xa4   : > { %573 = vmatmul.bf16.gmra.mxu0 %v991_v41 }
  0xa5   : > { %613 = vmatmul.bf16.gmra.mxu2 %v1055_v42 }
  0xa9   : > { %v675_v57 = vpop.f32.mrf.mxu3 }
  0xaa   : > { %v633_v44 = vpop.f32.mrf.mxu1 }
  0xb1   : > { %v539_v47 = vpop.f32.mrf.mxu0  ;;  %v678_v2 = vpop.f32.mrf.mxu3 }
  0xb2   : > { %v540_v48 = vadd.f32 %v1509_v45, %v539_v47  ;;  %v635_v49 = vpop.f32.mrf.mxu1 }
  0xb4   : > { %v629_v50 = vadd.f32 %v628_v36, %v540_v48 }
  0xb6   : > { %v708_v51 = vmax.f32 %v629_v50, 0.0 }
  0xb8   : > { %v740_v52 = vpack.c.bf16 %v708_v51, %v708_v51  ;;  %v1515_v53 = vpop.f32.mrf.mxu2 }
  0xb9   : > { %v541_v54 = vpop.f32.mrf.mxu0  ;;  %v680_v14 = vpop.f32.mrf.mxu3 }
  0xba   : > { %773 = vst.msk [vmem:[%s1517_s11] sm:$0xf] %vm772_vm1, %v740_v52  ;;  %v542_v55 = vadd.f32 %v1509_v45, %v541_v54  ;;  %v638_v56 = vpop.f32.mrf.mxu1 }
  0xbc   : > { %v631_v58 = vadd.f32 %v630_v43, %v542_v55 }
  0xbe   : > { %v709_v59 = vmax.f32 %v631_v58, 0.0 }
  0xc0   : > { %v741_v60 = vpack.c.bf16 %v709_v59, %v709_v59  ;;  %v1522_v61 = vpop.f32.mrf.mxu2 }
  0xc1   : > { %v544_v62 = vpop.f32.mrf.mxu0  ;;  %v683_v29 = vpop.f32.mrf.mxu3 }
  0xc2   : > { %774 = vst.msk [vmem:[%s1517_s11 + $0x4] sm:$0xf] %vm772_vm1, %v741_v60  ;;  %v545_v63 = vadd.f32 %v1509_v45, %v544_v62  ;;  %v640_v0 = vpop.f32.mrf.mxu1 }
  0xc4   : > { %v634_v1 = vadd.f32 %v633_v44, %v545_v63 }
  0xc6   : > { %v710_v3 = vmax.f32 %v634_v1, 0.0 }
  0xc8   : > { %v742_v4 = vpack.c.bf16 %v710_v3, %v710_v3  ;;  %v584_v5 = vpop.f32.mrf.mxu2 }
  0xc9   : > { %v585_v6 = vadd.f32 %v1509_v45, %v584_v5  ;;  %v546_v7 = vpop.f32.mrf.mxu0 }
  0xca   : > { %775 = vst.msk [vmem:[%s1517_s11 + $0x8] sm:$0xf] %vm772_vm1, %v742_v4  ;;  %v547_v8 = vadd.f32 %v1509_v45, %v546_v7  ;;  %v643_v9 = vpop.f32.mrf.mxu1 }
  0xcb   : > { %v674_v10 = vadd.f32 %v673_v46, %v585_v6  ;;  %v685_v46 = vpop.f32.mrf.mxu3 }
  0xcc   : > { %v636_v11 = vadd.f32 %v635_v49, %v547_v8 }
  0xcd   : > { %v726_v12 = vmax.f32 %v674_v10, 0.0 }
  0xce   : > { %v711_v13 = vmax.f32 %v636_v11, 0.0 }
  0xcf   : > { %v758_v15 = vpack.c.bf16 %v726_v12, %v726_v12 }
  0xd0   : > { %v743_v16 = vpack.c.bf16 %v711_v13, %v711_v13  ;;  %v586_v17 = vpop.f32.mrf.mxu2 }
  0xd1   : > { %791 = vst.msk [vmem:[%s1517_s11 + $0x48] sm:$0xf] %vm772_vm1, %v758_v15  ;;  %v587_v18 = vadd.f32 %v1509_v45, %v586_v17  ;;  %v549_v19 = vpop.f32.mrf.mxu0 }
  0xd2   : > { %776 = vst.msk [vmem:[%s1517_s11 + $0xc] sm:$0xf] %vm772_vm1, %v743_v16  ;;  %v550_v20 = vadd.f32 %v1509_v45, %v549_v19  ;;  %v645_v21 = vpop.f32.mrf.mxu1 }
  0xd3   : > { %v676_v22 = vadd.f32 %v675_v57, %v587_v18  ;;  %v688_v62 = vpop.f32.mrf.mxu3 }
  0xd4   : > { %v639_v23 = vadd.f32 %v638_v56, %v550_v20 }
  0xd5   : > { %v727_v24 = vmax.f32 %v676_v22, 0.0 }
  0xd6   : > { %v712_v25 = vmax.f32 %v639_v23, 0.0 }
  0xd7   : > { %v759_v26 = vpack.c.bf16 %v727_v24, %v727_v24 }
  0xd8   : > { %v744_v27 = vpack.c.bf16 %v712_v25, %v712_v25  ;;  %v589_v28 = vpop.f32.mrf.mxu2 }
  0xd9   : > { %792 = vst.msk [vmem:[%s1517_s11 + $0x4c] sm:$0xf] %vm772_vm1, %v759_v26  ;;  %v590_v30 = vadd.f32 %v1509_v45, %v589_v28  ;;  %v551_v31 = vpop.f32.mrf.mxu0 }
  0xda   : > { %777 = vst.msk [vmem:[%s1517_s11 + $0x10] sm:$0xf] %vm772_vm1, %v744_v27  ;;  %v552_v32 = vadd.f32 %v1509_v45, %v551_v31  ;;  %v648_v33 = vpop.f32.mrf.mxu1 }
  0xdb   : > { %v679_v34 = vadd.f32 %v678_v2, %v590_v30  ;;  %v690_v12 = vpop.f32.mrf.mxu3 }
  0xdc   : > { %v641_v35 = vadd.f32 %v640_v0, %v552_v32 }
  0xdd   : > { %v728_v36 = vmax.f32 %v679_v34, 0.0 }
  0xde   : > { %v713_v37 = vmax.f32 %v641_v35, 0.0 }
  0xdf   : > { %v760_v38 = vpack.c.bf16 %v728_v36, %v728_v36 }
  0xe0   : > { %v745_v39 = vpack.c.bf16 %v713_v37, %v713_v37  ;;  %v591_v40 = vpop.f32.mrf.mxu2 }
  0xe1   : > { %793 = vst.msk [vmem:[%s1517_s11 + $0x50] sm:$0xf] %vm772_vm1, %v760_v38  ;;  %v592_v41 = vadd.f32 %v1509_v45, %v591_v40  ;;  %v554_v42 = vpop.f32.mrf.mxu0 }
  0xe2   : > { %778 = vst.msk [vmem:[%s1517_s11 + $0x14] sm:$0xf] %vm772_vm1, %v745_v39  ;;  %v555_v43 = vadd.f32 %v1509_v45, %v554_v42  ;;  %v650_v44 = vpop.f32.mrf.mxu1 }
  0xe3   : > { %v681_v47 = vadd.f32 %v680_v14, %v592_v41  ;;  %v693_v27 = vpop.f32.mrf.mxu3 }
  0xe4   : > { %v644_v48 = vadd.f32 %v643_v9, %v555_v43 }
  0xe5   : > { %v729_v49 = vmax.f32 %v681_v47, 0.0 }
  0xe6   : > { %v714_v50 = vmax.f32 %v644_v48, 0.0 }
  0xe7   : > { %v761_v51 = vpack.c.bf16 %v729_v49, %v729_v49 }
  0xe8   : > { %v746_v52 = vpack.c.bf16 %v714_v50, %v714_v50  ;;  %v594_v54 = vpop.f32.mrf.mxu2 }
  0xe9   : > { %794 = vst.msk [vmem:[%s1517_s11 + $0x54] sm:$0xf] %vm772_vm1, %v761_v51  ;;  %v595_v55 = vadd.f32 %v1509_v45, %v594_v54  ;;  %v556_v56 = vpop.f32.mrf.mxu0 }
  0xea   : > { %779 = vst.msk [vmem:[%s1517_s11 + $0x18] sm:$0xf] %vm772_vm1, %v746_v52  ;;  %v557_v57 = vadd.f32 %v1509_v45, %v556_v56  ;;  %v653_v58 = vpop.f32.mrf.mxu1 }
  0xeb   : > { %v684_v59 = vadd.f32 %v683_v29, %v595_v55  ;;  %v695_v43 = vpop.f32.mrf.mxu3 }
  0xec   : > { %v646_v60 = vadd.f32 %v645_v21, %v557_v57 }
  0xed   : > { %v730_v63 = vmax.f32 %v684_v59, 0.0 }
  0xee   : > { %v715_v0 = vmax.f32 %v646_v60, 0.0 }
  0xef   : > { %v762_v1 = vpack.c.bf16 %v730_v63, %v730_v63 }
  0xf0   : > { %v747_v2 = vpack.c.bf16 %v715_v0, %v715_v0  ;;  %v596_v3 = vpop.f32.mrf.mxu2 }
  0xf1   : > { %795 = vst.msk [vmem:[%s1517_s11 + $0x58] sm:$0xf] %vm772_vm1, %v762_v1  ;;  %v597_v4 = vadd.f32 %v1509_v45, %v596_v3  ;;  %v559_v5 = vpop.f32.mrf.mxu0 }
  0xf2   : > { %780 = vst.msk [vmem:[%s1517_s11 + $0x1c] sm:$0xf] %vm772_vm1, %v747_v2  ;;  %v560_v6 = vadd.f32 %v1509_v45, %v559_v5  ;;  %v655_v7 = vpop.f32.mrf.mxu1  ;;  %v580_v2 = vadd.f32 %v1509_v45, %v1515_v53 }
  0xf3   : > { %v686_v8 = vadd.f32 %v685_v46, %v597_v4  ;;  %v698_v59 = vpop.f32.mrf.mxu3 }
  0xf4   : > { %v649_v9 = vadd.f32 %v648_v33, %v560_v6 }
  0xf5   : > { %v731_v10 = vmax.f32 %v686_v8, 0.0 }
  0xf6   : > { %v716_v11 = vmax.f32 %v649_v9, 0.0 }
  0xf7   : > { %v763_v13 = vpack.c.bf16 %v731_v10, %v731_v10 }
  0xf8   : > { %v748_v14 = vpack.c.bf16 %v716_v11, %v716_v11  ;;  %v599_v15 = vpop.f32.mrf.mxu2 }
  0xf9   : > { %796 = vst.msk [vmem:[%s1517_s11 + $0x5c] sm:$0xf] %vm772_vm1, %v763_v13  ;;  %v600_v16 = vadd.f32 %v1509_v45, %v599_v15  ;;  %v561_v17 = vpop.f32.mrf.mxu0 }
  0xfa   : > { %781 = vst.msk [vmem:[%s1517_s11 + $0x20] sm:$0xf] %vm772_vm1, %v748_v14  ;;  %v562_v18 = vadd.f32 %v1509_v45, %v561_v17  ;;  %v658_v19 = vpop.f32.mrf.mxu1  ;;  %v582_v17 = vadd.f32 %v1509_v45, %v1522_v61 }
  0xfb   : > { %v689_v20 = vadd.f32 %v688_v62, %v600_v16  ;;  %v700_v53 = vpop.f32.mrf.mxu3 }
  0xfc   : > { %v651_v21 = vadd.f32 %v650_v44, %v562_v18 }
  0xfd   : > { %v732_v22 = vmax.f32 %v689_v20, 0.0 }
  0xfe   : > { %v717_v23 = vmax.f32 %v651_v21, 0.0 }
  0xff   : > { %v764_v24 = vpack.c.bf16 %v732_v22, %v732_v22 }
 0x100   : > { %v749_v25 = vpack.c.bf16 %v717_v23, %v717_v23  ;;  %v601_v26 = vpop.f32.mrf.mxu2 }
 0x101   : > { %797 = vst.msk [vmem:[%s1517_s11 + $0x60] sm:$0xf] %vm772_vm1, %v764_v24  ;;  %v602_v28 = vadd.f32 %v1509_v45, %v601_v26  ;;  %v564_v29 = vpop.f32.mrf.mxu0 }
 0x102   : > { %782 = vst.msk [vmem:[%s1517_s11 + $0x24] sm:$0xf] %vm772_vm1, %v749_v25  ;;  %v565_v30 = vadd.f32 %v1509_v45, %v564_v29  ;;  %v660_v31 = vpop.f32.mrf.mxu1 }
 0x103   : > { %v691_v32 = vadd.f32 %v690_v12, %v602_v28 }
 0x104   : > { %v654_v33 = vadd.f32 %v653_v58, %v565_v30  ;;  %v703_v30 = vpop.f32.mrf.mxu3 }
 0x105   : > { %v733_v34 = vmax.f32 %v691_v32, 0.0 }
 0x106   : > { %v718_v35 = vmax.f32 %v654_v33, 0.0 }
 0x107   : > { %v765_v36 = vpack.c.bf16 %v733_v34, %v733_v34 }
 0x108   : > { %v750_v37 = vpack.c.bf16 %v718_v35, %v718_v35  ;;  %v604_v38 = vpop.f32.mrf.mxu2 }
 0x109   : > { %798 = vst.msk [vmem:[%s1517_s11 + $0x64] sm:$0xf] %vm772_vm1, %v765_v36  ;;  %v605_v39 = vadd.f32 %v1509_v45, %v604_v38  ;;  %v566_v40 = vpop.f32.mrf.mxu0 }
 0x10a   : > { %783 = vst.msk [vmem:[%s1517_s11 + $0x28] sm:$0xf] %vm772_vm1, %v750_v37  ;;  %v567_v41 = vadd.f32 %v1509_v45, %v566_v40  ;;  %v663_v42 = vpop.f32.mrf.mxu1 }
 0x10b   : > { %v694_v44 = vadd.f32 %v693_v27, %v605_v39 }
 0x10c   : > { %v656_v46 = vadd.f32 %v655_v7, %v567_v41 }
 0x10d   : > { %v734_v47 = vmax.f32 %v694_v44, 0.0 }
 0x10e   : > { %v719_v48 = vmax.f32 %v656_v46, 0.0 }
 0x10f   : > { %v766_v49 = vpack.c.bf16 %v734_v47, %v734_v47 }
 0x110   : > { %v751_v50 = vpack.c.bf16 %v719_v48, %v719_v48  ;;  %v606_v51 = vpop.f32.mrf.mxu2 }
 0x111   : > { %799 = vst.msk [vmem:[%s1517_s11 + $0x68] sm:$0xf] %vm772_vm1, %v766_v49  ;;  %v607_v52 = vadd.f32 %v1509_v45, %v606_v51  ;;  %v569_v54 = vpop.f32.mrf.mxu0 }
 0x112   : > { %784 = vst.msk [vmem:[%s1517_s11 + $0x2c] sm:$0xf] %vm772_vm1, %v751_v50  ;;  %v570_v55 = vadd.f32 %v1509_v45, %v569_v54  ;;  %v665_v56 = vpop.f32.mrf.mxu1 }
 0x113   : > { %v696_v57 = vadd.f32 %v695_v43, %v607_v52  ;;  %v705_v43 = vpop.f32.mrf.mxu3 }
 0x114   : > { %v659_v58 = vadd.f32 %v658_v19, %v570_v55 }
 0x115   : > { %v735_v60 = vmax.f32 %v696_v57, 0.0 }
 0x116   : > { %v720_v62 = vmax.f32 %v659_v58, 0.0 }
 0x117   : > { %v767_v63 = vpack.c.bf16 %v735_v60, %v735_v60 }
 0x118   : > { %v752_v0 = vpack.c.bf16 %v720_v62, %v720_v62  ;;  %v609_v1 = vpop.f32.mrf.mxu2 }
 0x119   : > { %800 = vst.msk [vmem:[%s1517_s11 + $0x6c] sm:$0xf] %vm772_vm1, %v767_v63  ;;  %v610_v3 = vadd.f32 %v1509_v45, %v609_v1  ;;  %v571_v4 = vpop.f32.mrf.mxu0 }
 0x11a   : > { %785 = vst.msk [vmem:[%s1517_s11 + $0x30] sm:$0xf] %vm772_vm1, %v752_v0  ;;  %v572_v5 = vadd.f32 %v1509_v45, %v571_v4  ;;  %v668_v6 = vpop.f32.mrf.mxu1 }
 0x11b   : > { %v699_v7 = vadd.f32 %v698_v59, %v610_v3  ;;  %v669_v8 = vadd.f32 %v668_v6, %v580_v2 }
 0x11c   : > { %v661_v9 = vadd.f32 %v660_v31, %v572_v5 }
 0x11d   : > { %v736_v10 = vmax.f32 %v699_v7, 0.0  ;;  %v724_v11 = vmax.f32 %v669_v8, 0.0 }
 0x11e   : > { %v721_v12 = vmax.f32 %v661_v9, 0.0 }
 0x11f   : > { %v768_v13 = vpack.c.bf16 %v736_v10, %v736_v10  ;;  %v756_v14 = vpack.c.bf16 %v724_v11, %v724_v11 }
 0x120   : > { %v753_v15 = vpack.c.bf16 %v721_v12, %v721_v12  ;;  %v611_v16 = vpop.f32.mrf.mxu2 }
 0x121   : > { %801 = vst.msk [vmem:[%s1517_s11 + $0x70] sm:$0xf] %vm772_vm1, %v768_v13  ;;  %v612_v18 = vadd.f32 %v1509_v45, %v611_v16  ;;  %v574_v19 = vpop.f32.mrf.mxu0 }
 0x122   : > { %786 = vst.msk [vmem:[%s1517_s11 + $0x34] sm:$0xf] %vm772_vm1, %v753_v15  ;;  %v575_v20 = vadd.f32 %v1509_v45, %v574_v19  ;;  %v670_v21 = vpop.f32.mrf.mxu1 }
 0x123   : > { %789 = vst.msk [vmem:[%s1517_s11 + $0x40] sm:$0xf] %vm772_vm1, %v756_v14  ;;  %v701_v22 = vadd.f32 %v700_v53, %v612_v18  ;;  %v671_v23 = vadd.f32 %v670_v21, %v582_v17 }
 0x124   : > { %v664_v24 = vadd.f32 %v663_v42, %v575_v20 }
 0x125   : > { %v737_v25 = vmax.f32 %v701_v22, 0.0  ;;  %v725_v61 = vmax.f32 %v671_v23, 0.0 }
 0x126   : > { %v722_v26 = vmax.f32 %v664_v24, 0.0 }
 0x127   : > { %v769_v27 = vpack.c.bf16 %v737_v25, %v737_v25  ;;  %v757_v28 = vpack.c.bf16 %v725_v61, %v725_v61 }
 0x128   : > { %v754_v29 = vpack.c.bf16 %v722_v26, %v722_v26  ;;  %v614_v31 = vpop.f32.mrf.mxu2 }
 0x129   : > { %802 = vst.msk [vmem:[%s1517_s11 + $0x74] sm:$0xf] %vm772_vm1, %v769_v27  ;;  %v615_v32 = vadd.f32 %v1509_v45, %v614_v31  ;;  %v576_v33 = vpop.f32.mrf.mxu0 }
 0x12a   : > { %787 = vst.msk [vmem:[%s1517_s11 + $0x38] sm:$0xf] %vm772_vm1, %v754_v29  ;;  %v577_v34 = vadd.f32 %v1509_v45, %v576_v33 }
 0x12b   : > { %790 = vst.msk [vmem:[%s1517_s11 + $0x44] sm:$0xf] %vm772_vm1, %v757_v28  ;;  %v704_v35 = vadd.f32 %v703_v30, %v615_v32 }
 0x12c   : > { %v666_v36 = vadd.f32 %v665_v56, %v577_v34 }
 0x12d   : > { %v738_v37 = vmax.f32 %v704_v35, 0.0 }
 0x12e   : > { %v723_v38 = vmax.f32 %v666_v36, 0.0 }
 0x12f   : > { %v770_v39 = vpack.c.bf16 %v738_v37, %v738_v37 }
 0x130   : > { %v755_v40 = vpack.c.bf16 %v723_v38, %v723_v38  ;;  %v616_v41 = vpop.f32.mrf.mxu2 }
 0x131   : > { %803 = vst.msk [vmem:[%s1517_s11 + $0x78] sm:$0xf] %vm772_vm1, %v770_v39  ;;  %v617_v42 = vadd.f32 %v1509_v45, %v616_v41 }
 0x132   : > { %788 = vst.msk [vmem:[%s1517_s11 + $0x3c] sm:$0xf] %vm772_vm1, %v755_v40 }
 0x133   : > { %v706_v44 = vadd.f32 %v705_v43, %v617_v42 }
 0x135   : > { %v739_v46 = vmax.f32 %v706_v44, 0.0 }
 0x137   : > { %v771_v47 = vpack.c.bf16 %v739_v46, %v739_v46 }
 0x139   : > { %804 = vst.msk [vmem:[%s1517_s11 + $0x7c] sm:$0xf] %vm772_vm1, %v771_v47 }
 0x13a   : > { %1260 = shalt.err (!%p1257_p5)
}
 0x13b   : > { %s1313_s8 = smov 64   ;;  %s1314_s9 = smov 4  }
 0x13c   : > { %1175 = dma.vmem_to_hbm [thread:$0]  (%p1375_p4), %s820_s15, 2048, %s822_s26, %s806_s27, %s1313_s8, %s1313_s8, %s1314_s9  }
 0x13d PF: > { %p1181_p6 = scmp.ge.s32.totalorder %s1311_s17, 2  ;;  %s836_s10 = sand.u32 1, %s1291_s12  }
 0x13e   : > { %s837_s11 = scalar_lea.sflag [#allocation3], %s836_s10 }
 0x13f   : > { %p1178_p7 = pnand %p1181_p6, %p1382_p8 }
 0x141   : > { %p1179_p9 = pneg %p1178_p7 }
 0x143   : > { %1286 = dma.done.wait (%p1179_p9), %s837_s11, 2048  }
 0x144   : > { %1288 = vsyncadd (%p1179_p9), %s837_s11, 4294965248  ;;  %s16_s17 = sadd.s32 1, %s1311_s17   ;;  %s1663_s12 = smov %s1295_s13 }
 0x145   : > { %p13_p10 = scmp.ge.s32.totalorder %s16_s17, 4   ;;  %s1664_s13 = smov %s1299_s14 }
 0x146   : > { %s1665_s14 = smov %s1388_s25  ;;  %s1666_s15 = smov %s1307_s16 }
 0x147   : > { %s1667_s16 = smov %s1669_s20  ;;  %15 = sbr.rel (!%p13_p10) target bundleno = 4 (0x4), region = 73 }
 0x14c   :  { %843 = vsyncpa [#allocation3], 1 }
 0x14d   :  { %845 = vsyncpa [#allocation3 + $0x1], 1 }

</bundles_post_ra>
